<compile_context>
chip_gen: v7x
topology: tpu7x:2x2x1
jax: 0.10.0
libtpu: 0.0.40
codegen_flags: <defaults>
</compile_context>

<pallas_src>
from functools import partial

import jax
import jax.numpy as jnp
from jax.experimental import pallas as pl
from jax.experimental.pallas import tpu as pltpu  # noqa: F401  (TPU backend import)


def dnn_kernel(x_ref, w1_ref, b1_ref, w2_ref, b2_ref, out_ref):
    # fc1: (B_pad, K_pad) @ (K_pad, H) + (1, H), then ReLU
    h = jnp.dot(x_ref[...], w1_ref[...], preferred_element_type=jnp.float32)
    h = jnp.maximum(h + b1_ref[...], 0.0)
    # fc2: (B_pad, H) @ (H, N_pad) + (1, N_pad)   (N padded to 128 -> lane-dense store)
    y = jnp.dot(h, w2_ref[...], preferred_element_type=jnp.float32)
    out_ref[...] = (y + b2_ref[...]).astype(out_ref.dtype)


def prepare_dnn_params(w1, b1, w2, b2):
    """Pad parameters ONCE at init (static weights -> no per-call pad kernels).

    w1: (input_size, hidden); b1: (1, hidden);
    w2: (hidden, output_size); b2: (1, output_size).
    """
    K, H = w1.shape
    N = w2.shape[1]
    K_pad = 8 * pl.cdiv(max(K, 8), 8)        # f32 sublane multiple for the first matmul LHS/RHS
    N_pad = 128 * pl.cdiv(max(N, 128), 128)  # lane-dense output width

    w1_p = jnp.zeros((K_pad, H), jnp.float32).at[:K, :].set(w1)
    b1_p = b1.astype(jnp.float32).reshape(1, H)
    w2_p = jnp.zeros((H, N_pad), jnp.float32).at[:, :N].set(w2)
    b2_p = jnp.zeros((1, N_pad), jnp.float32).at[:, :N].set(b2)
    return w1_p, b1_p, w2_p, b2_p


@partial(jax.jit, static_argnames=("out_size",))
def dnn_forward(x, w1_p, b1_p, w2_p, b2_p, *, out_size):
    """x: (B, input_size) f32; pre-padded params from prepare_dnn_params()."""
    B, K = x.shape
    K_pad, H = w1_p.shape
    N_pad = w2_p.shape[1]
    # Single grid step: pad batch to the f32 sublane multiple (250 -> 256),
    # which also fills the 256-deep MXU M dimension on v6e/v7x.
    B_pad = 8 * pl.cdiv(max(B, 8), 8)

    # Only the activation is padded per call (fused into this jit by XLA).
    x_p = jnp.zeros((B_pad, K_pad), jnp.float32).at[:B, :K].set(x)

    flops = 2 * B_pad * (K_pad * H + H * N_pad)
    bytes_accessed = 4 * (
        B_pad * K_pad + K_pad * H + H + H * N_pad + N_pad + B_pad * N_pad
    )

    # No grid, no BlockSpecs: every operand is a single full-size VMEM block
    # (total working set << 1 MiB), so there is zero grid-step overhead and
    # nothing to multi-buffer.
    out_padded = pl.pallas_call(
        dnn_kernel,
        out_shape=jax.ShapeDtypeStruct((B_pad, N_pad), jnp.float32),
        cost_estimate=pl.CostEstimate(
            flops=flops, transcendentals=0, bytes_accessed=bytes_accessed
        ),
    )(x_p, w1_p, b1_p, w2_p, b2_p)

    # Strip batch + lane padding back to the logical output shape.
    # NOTE: padded rows of out_padded hold relu(b1)@w2+b2 garbage; never use them.
    return out_padded[:B, :out_size]


def dnn_reference(x, w1, b1, w2, b2):
    h = jnp.maximum(x @ w1 + b1, 0.0)
    return h @ w2 + b2


if __name__ == "__main__":
    # Shapes implied by the module: input_size = 4 anchor distances,
    # hidden_size = 128, output_size = 2 (x, y), 250 HW test rows.
    batch = 250
    input_size = 4
    hidden_size = 128
    output_size = 2

    key = jax.random.PRNGKey(0)
    kx, k1, k2, k3, k4 = jax.random.split(key, 5)

    # Deterministic synthetic parameters (PyTorch nn.Linear-like scale);
    # inputs mimic MinMax-scaled distances in [0, 1].
    x = jax.random.uniform(kx, (batch, input_size), dtype=jnp.float32)
    w1 = jax.random.uniform(k1, (input_size, hidden_size), jnp.float32,
                            minval=-1.0, maxval=1.0) / jnp.sqrt(input_size)
    b1 = jax.random.uniform(k2, (1, hidden_size), jnp.float32,
                            minval=-1.0, maxval=1.0) / jnp.sqrt(input_size)
    w2 = jax.random.uniform(k3, (hidden_size, output_size), jnp.float32,
                            minval=-1.0, maxval=1.0) / jnp.sqrt(hidden_size)
    b2 = jax.random.uniform(k4, (1, output_size), jnp.float32,
                            minval=-1.0, maxval=1.0) / jnp.sqrt(hidden_size)

    # Pad static parameters exactly once, outside the forward path.
    w1_p, b1_p, w2_p, b2_p = prepare_dnn_params(w1, b1, w2, b2)

    out = dnn_forward(x, w1_p, b1_p, w2_p, b2_p, out_size=output_size)
    jax.block_until_ready(out)

    ref = dnn_reference(x, w1, b1, w2, b2)
    assert out.shape == (batch, output_size)
    assert jnp.allclose(out, ref, atol=1e-5, rtol=1e-5)

    print("KERNEL_OK")
</pallas_src>

<mosaic_0001>
module attributes {stable_mosaic.version = 11 : i64} {
  func.func @dnn_kernel(%arg0: memref<256x8xf32, #tpu.memory_space<vmem>>, %arg1: memref<8x128xf32, #tpu.memory_space<vmem>>, %arg2: memref<1x128xf32, #tpu.memory_space<vmem>>, %arg3: memref<128x128xf32, #tpu.memory_space<vmem>>, %arg4: memref<1x128xf32, #tpu.memory_space<vmem>>, %arg5: memref<256x128xf32, #tpu.memory_space<vmem>>) attributes {dimension_semantics = [], scalar_prefetch = 0 : i64, scratch_operands = 0 : i64, tpu.core_type = #tpu.core_type<tc>} {
    %c0 = arith.constant 0 : index
    %c0_0 = arith.constant 0 : index
    %0 = vector.load %arg0[%c0, %c0_0] : memref<256x8xf32, #tpu.memory_space<vmem>>, vector<256x8xf32>
    %c0_1 = arith.constant 0 : index
    %c0_2 = arith.constant 0 : index
    %1 = vector.load %arg1[%c0_1, %c0_2] : memref<8x128xf32, #tpu.memory_space<vmem>>, vector<8x128xf32>
    %cst = arith.constant dense<0.000000e+00> : vector<256x128xf32>
    %2 = tpu.matmul %0, %1, %cst {dimension_numbers = #tpu.dot_dimension_numbers<[1], [0], [0], [1], [0, 0, 1, 1], [], []>} : vector<256x8xf32>, vector<8x128xf32>, vector<256x128xf32> -> vector<256x128xf32>
    %c0_3 = arith.constant 0 : index
    %c0_4 = arith.constant 0 : index
    %3 = vector.load %arg2[%c0_3, %c0_4] : memref<1x128xf32, #tpu.memory_space<vmem>>, vector<1x128xf32>
    %4 = vector.broadcast %3 : vector<1x128xf32> to vector<256x128xf32>
    %5 = arith.addf %2, %4 : vector<256x128xf32>
    %cst_5 = arith.constant 0.000000e+00 : f32
    %6 = vector.broadcast %cst_5 : f32 to vector<256x128xf32>
    %7 = arith.maximumf %5, %6 : vector<256x128xf32>
    %c0_6 = arith.constant 0 : index
    %c0_7 = arith.constant 0 : index
    %8 = vector.load %arg3[%c0_6, %c0_7] : memref<128x128xf32, #tpu.memory_space<vmem>>, vector<128x128xf32>
    %cst_8 = arith.constant dense<0.000000e+00> : vector<256x128xf32>
    %9 = tpu.matmul %7, %8, %cst_8 {dimension_numbers = #tpu.dot_dimension_numbers<[1], [0], [0], [1], [0, 0, 1, 1], [], []>} : vector<256x128xf32>, vector<128x128xf32>, vector<256x128xf32> -> vector<256x128xf32>
    %c0_9 = arith.constant 0 : index
    %c0_10 = arith.constant 0 : index
    %10 = vector.load %arg4[%c0_9, %c0_10] : memref<1x128xf32, #tpu.memory_space<vmem>>, vector<1x128xf32>
    %11 = vector.broadcast %10 : vector<1x128xf32> to vector<256x128xf32>
    %12 = arith.addf %9, %11 : vector<256x128xf32>
    %c0_11 = arith.constant 0 : index
    %c0_12 = arith.constant 0 : index
    %13 = vector.load %arg5[%c0_11, %c0_12] : memref<256x128xf32, #tpu.memory_space<vmem>>, vector<256x128xf32>
    tpu.vector_store %arg5[%c0_11, %c0_12], %12 {strides = array<i32>} : memref<256x128xf32, #tpu.memory_space<vmem>>, vector<256x128xf32>,
    return
  }
}

</mosaic_0001>

<bundles_post_ra>
// kernel: dnn_forward.1
= control target key start
LH: loop header
LB: loop body
LE: loop exit
PB: predicated region body
PF: predicated region fallthrough
CT: control target
= control target key end

     0   :  { %vm60_vm0 = vcmask 64512   ;;  %s1370_s1 = inlined_call_operand.vmem [shape: f32[8,128], index: 1, kind: input, shape index: {}]   ;;  %s1371_s0 = inlined_call_operand.vmem [shape: f32[256,8], index: 0, kind: input, shape index: {}]   ;;  %s1372_s3 = inlined_call_operand.vmem [shape: f32[128,128], index: 3, kind: input, shape index: {}]   ;;  %s1373_s2 = inlined_call_operand.vmem [shape: f32[1,128], index: 2, kind: input, shape index: {}]   ;;  %s1374_s4 = inlined_call_operand.vmem [shape: f32[1,128], index: 4, kind: input, shape index: {}]   ;;  %s1375_s5 = inlined_call_operand.vmem [shape: f32[256,128], index: 5, kind: output, shape index: {}]  }
   0x1   :  { %v52_v0 = vld [vmem:[%s1370_s1] sm:$0xff]  ;;  %v21_v2 = vld [vmem:[%s1371_s0 + $0x8] sm:$0xff]  ;;  %v22_v3 = vld [vmem:[%s1371_s0 + $0x10] sm:$0xff] }
   0x2   :  { %v20_v1 = vld [vmem:[%s1371_s0] sm:$0xff]  ;;  %813 = vmatprep.subr.mxu0 %v52_v0  ;;  %v23_v4 = vld [vmem:[%s1371_s0 + $0x18] sm:$0xff]  ;;  %v25_v6 = vld [vmem:[%s1371_s0 + $0x28] sm:$0xff] }
   0x3   :  { %815 = vmatprep.mubr.msk.f32.mxu0 %vm60_vm0, %v20_v1  ;;  %814 = vmatpush3.msra.mxu0 %v52_v0  ;;  %v24_v5 = vld [vmem:[%s1371_s0 + $0x20] sm:$0xff]  ;;  %v26_v7 = vld [vmem:[%s1371_s0 + $0x30] sm:$0xff]  ;;  %v415_v9 = vld [vmem:[%s1372_s3 + $0x8] sm:$0xff] }
   0x4   :  { %816 = vmatmul.mubr.msk.f32.vlgmr.msra.gmra.mrb[0].mxu0 %vm60_vm0, %v21_v2  ;;  %v414_v8 = vld [vmem:[%s1372_s3] sm:$0xff]  ;;  %v416_v10 = vld [vmem:[%s1372_s3 + $0x10] sm:$0xff]  ;;  %v27_v11 = vld [vmem:[%s1371_s0 + $0x38] sm:$0xff] }
   0x5   :  { %818 = vmatprep.mubr.msk.f32.mxu0 %vm60_vm0, %v22_v3  ;;  %v943_v12 = vpack.c.bf16 %v415_v9, %v414_v8  ;;  %v417_v13 = vld [vmem:[%s1372_s3 + $0x18] sm:$0xff]  ;;  %v28_v14 = vld [vmem:[%s1371_s0 + $0x40] sm:$0xff]  ;;  %v419_v17 = vld [vmem:[%s1372_s3 + $0x28] sm:$0xff] }
   0x6   :  { %v947_v15 = vpack.c.bf16 %v417_v13, %v416_v10  ;;  %v418_v16 = vld [vmem:[%s1372_s3 + $0x20] sm:$0xff]  ;;  %v29_v18 = vld [vmem:[%s1371_s0 + $0x48] sm:$0xff]  ;;  %v30_v19 = vld [vmem:[%s1371_s0 + $0x50] sm:$0xff] }
   0x7   :  { %944 = vmatprep.subr.bf16.mxu0 %v943_v12  ;;  %975 = vmatprep.subr.bf16.mxu1 %v943_v12  ;;  %v951_v20 = vpack.c.bf16 %v419_v17, %v418_v16  ;;  %v420_v21 = vld [vmem:[%s1372_s3 + $0x30] sm:$0xff]  ;;  %v421_v22 = vld [vmem:[%s1372_s3 + $0x38] sm:$0xff]  ;;  %v32_v24 = vld [vmem:[%s1371_s0 + $0x60] sm:$0xff] }
   0x8   :  { %819 = vmatmul.mubr.msk.f32.gmra.mrb[2].mxu0 %vm60_vm0, %v23_v4  ;;  %983 = vmatpush3.bf16.msra.mxu1 %v943_v12  ;;  %v31_v23 = vld [vmem:[%s1371_s0 + $0x58] sm:$0xff]  ;;  %v955_v25 = vpack.c.bf16 %v421_v22, %v420_v21  ;;  %v422_v26 = vld [vmem:[%s1372_s3 + $0x40] sm:$0xff]  ;;  %v423_v27 = vld [vmem:[%s1372_s3 + $0x48] sm:$0xff] }
   0x9   :  { %821 = vmatprep.mubr.msk.f32.mxu0 %vm60_vm0, %v24_v5  ;;  %946 = vmatpush3.bf16.msra.mxu0 %v943_v12  ;;  %v33_v28 = vld [vmem:[%s1371_s0 + $0x68] sm:$0xff]  ;;  %v34_v29 = vld [vmem:[%s1371_s0 + $0x70] sm:$0xff]  ;;  %v959_v30 = vpack.c.bf16 %v423_v27, %v422_v26  ;;  %v425_v32 = vld [vmem:[%s1372_s3 + $0x58] sm:$0xff] }
   0xa   :  { %948 = vmatprep.subr.bf16.mxu0 %v947_v15  ;;  %976 = vmatprep.subr.bf16.mxu1 %v947_v15  ;;  %v424_v31 = vld [vmem:[%s1372_s3 + $0x50] sm:$0xff]  ;;  %v35_v33 = vld [vmem:[%s1371_s0 + $0x78] sm:$0xff]  ;;  %v36_v34 = vld [vmem:[%s1371_s0 + $0x80] sm:$0xff] }
   0xb   :  { %v963_v35 = vpack.c.bf16 %v425_v32, %v424_v31  ;;  %v426_v36 = vld [vmem:[%s1372_s3 + $0x60] sm:$0xff]  ;;  %v427_v37 = vld [vmem:[%s1372_s3 + $0x68] sm:$0xff]  ;;  %v38_v39 = vld [vmem:[%s1371_s0 + $0x90] sm:$0xff] }
   0xc   :  { %822 = vmatmul.mubr.msk.f32.gmra.mrb[4].mxu0 %vm60_vm0, %v25_v6  ;;  %984 = vmatpush3.bf16.msra.mxu1 %v947_v15  ;;  %v37_v38 = vld [vmem:[%s1371_s0 + $0x88] sm:$0xff]  ;;  %v967_v40 = vpack.c.bf16 %v427_v37, %v426_v36  ;;  %v39_v41 = vld [vmem:[%s1371_s0 + $0x98] sm:$0xff]  ;;  %v40_v42 = vld [vmem:[%s1371_s0 + $0xa0] sm:$0xff] }
   0xd   :  { %824 = vmatprep.mubr.msk.f32.mxu0 %vm60_vm0, %v26_v7  ;;  %950 = vmatpush3.bf16.msra.mxu0 %v947_v15  ;;  %v41_v43 = vld [vmem:[%s1371_s0 + $0xa8] sm:$0xff]  ;;  %v42_v44 = vld [vmem:[%s1371_s0 + $0xb0] sm:$0xff]  ;;  %v43_v45 = vld [vmem:[%s1371_s0 + $0xb8] sm:$0xff] }
   0xe   :  { %952 = vmatprep.subr.bf16.mxu0 %v951_v20  ;;  %977 = vmatprep.subr.bf16.mxu1 %v951_v20  ;;  %v44_v46 = vld [vmem:[%s1371_s0 + $0xc0] sm:$0xff]  ;;  %v45_v47 = vld [vmem:[%s1371_s0 + $0xc8] sm:$0xff]  ;;  %v46_v48 = vld [vmem:[%s1371_s0 + $0xd0] sm:$0xff] }
   0xf   :  { %v47_v49 = vld [vmem:[%s1371_s0 + $0xd8] sm:$0xff]  ;;  %v48_v50 = vld [vmem:[%s1371_s0 + $0xe0] sm:$0xff]  ;;  %v49_v51 = vld [vmem:[%s1371_s0 + $0xe8] sm:$0xff] }
  0x10   :  { %825 = vmatmul.mubr.msk.f32.gmra.mrb[6].mxu0 %vm60_vm0, %v27_v11  ;;  %985 = vmatpush3.bf16.msra.mxu1 %v951_v20  ;;  %v50_v52 = vld [vmem:[%s1371_s0 + $0xf0] sm:$0xff]  ;;  %v51_v53 = vld [vmem:[%s1371_s0 + $0xf8] sm:$0xff]  ;;  %v1203_v57 = vld [vmem:[%s1373_s2] ss:$0 sm:$0xff] }
  0x11   :  { %827 = vmatprep.mubr.msk.f32.mxu0 %vm60_vm0, %v28_v14  ;;  %954 = vmatpush3.bf16.msra.mxu0 %v951_v20  ;;  %v428_v54 = vld [vmem:[%s1372_s3 + $0x70] sm:$0xff]  ;;  %v429_v55 = vld [vmem:[%s1372_s3 + $0x78] sm:$0xff] }
  0x12   :  { %956 = vmatprep.subr.bf16.mxu0 %v955_v25  ;;  %978 = vmatprep.subr.bf16.mxu1 %v955_v25  ;;  %v971_v56 = vpack.c.bf16 %v429_v55, %v428_v54 }
  0x14   :  { %828 = vmatmul.mubr.msk.f32.gmra.mrb[8].mxu0 %vm60_vm0, %v29_v18  ;;  %986 = vmatpush3.bf16.msra.mxu1 %v955_v25 }
  0x15   :  { %830 = vmatprep.mubr.msk.f32.mxu0 %vm60_vm0, %v30_v19  ;;  %958 = vmatpush3.bf16.msra.mxu0 %v955_v25 }
  0x16   :  { %960 = vmatprep.subr.bf16.mxu0 %v959_v30  ;;  %979 = vmatprep.subr.bf16.mxu1 %v959_v30 }
  0x18   :  { %831 = vmatmul.mubr.msk.f32.gmra.mrb[10].mxu0 %vm60_vm0, %v31_v23  ;;  %987 = vmatpush3.bf16.msra.mxu1 %v959_v30 }
  0x19   :  { %833 = vmatprep.mubr.msk.f32.mxu0 %vm60_vm0, %v32_v24  ;;  %962 = vmatpush3.bf16.msra.mxu0 %v959_v30 }
  0x1a   :  { %964 = vmatprep.subr.bf16.mxu0 %v963_v35  ;;  %980 = vmatprep.subr.bf16.mxu1 %v963_v35 }
  0x1c   :  { %834 = vmatmul.mubr.msk.f32.gmra.mrb[12].mxu0 %vm60_vm0, %v33_v28  ;;  %988 = vmatpush3.bf16.msra.mxu1 %v963_v35 }
  0x1d   :  { %836 = vmatprep.mubr.msk.f32.mxu0 %vm60_vm0, %v34_v29  ;;  %966 = vmatpush3.bf16.msra.mxu0 %v963_v35 }
  0x1e   :  { %968 = vmatprep.subr.bf16.mxu0 %v967_v40  ;;  %981 = vmatprep.subr.bf16.mxu1 %v967_v40 }
  0x20   :  { %837 = vmatmul.mubr.msk.f32.gmra.mrb[14].mxu0 %vm60_vm0, %v35_v33  ;;  %989 = vmatpush3.bf16.msra.mxu1 %v967_v40 }
  0x21   :  { %839 = vmatprep.mubr.msk.f32.mxu0 %vm60_vm0, %v36_v34  ;;  %970 = vmatpush3.bf16.msra.mxu0 %v967_v40 }
  0x22   :  { %972 = vmatprep.subr.bf16.mxu0 %v971_v56  ;;  %982 = vmatprep.subr.bf16.mxu1 %v971_v56 }
  0x24   :  { %840 = vmatmul.mubr.msk.f32.gmra.mrb[16].mxu0 %vm60_vm0, %v37_v38  ;;  %990 = vmatpush3.bf16.msra.mxu1 %v971_v56 }
  0x25   :  { %842 = vmatprep.mubr.msk.f32.mxu0 %vm60_vm0, %v38_v39  ;;  %974 = vmatpush3.bf16.msra.mxu0 %v971_v56 }
  0x28   :  { %843 = vmatmul.mubr.msk.f32.gmra.mrb[18].mxu0 %vm60_vm0, %v39_v41 }
  0x29   :  { %845 = vmatprep.mubr.msk.f32.mxu0 %vm60_vm0, %v40_v42 }
  0x2c   :  { %846 = vmatmul.mubr.msk.f32.gmra.mrb[20].mxu0 %vm60_vm0, %v41_v43 }
  0x2d   :  { %848 = vmatprep.mubr.msk.f32.mxu0 %vm60_vm0, %v42_v44 }
  0x30   :  { %849 = vmatmul.mubr.msk.f32.gmra.mrb[22].mxu0 %vm60_vm0, %v43_v45 }
  0x31   :  { %851 = vmatprep.mubr.msk.f32.mxu0 %vm60_vm0, %v44_v46 }
  0x34   :  { %852 = vmatmul.mubr.msk.f32.gmra.mrb[24].mxu0 %vm60_vm0, %v45_v47 }
  0x35   :  { %854 = vmatprep.mubr.msk.f32.mxu0 %vm60_vm0, %v46_v48 }
  0x38   :  { %855 = vmatmul.mubr.msk.f32.gmra.mrb[26].mxu0 %vm60_vm0, %v47_v49 }
  0x39   :  { %857 = vmatprep.mubr.msk.f32.mxu0 %vm60_vm0, %v48_v50 }
  0x3c   :  { %858 = vmatmul.mubr.msk.f32.gmra.mrb[28].mxu0 %vm60_vm0, %v49_v51 }
  0x3d   :  { %860 = vmatprep.mubr.msk.f32.mxu0 %vm60_vm0, %v50_v52 }
  0x40   :  { %861 = vmatmul.mubr.msk.f32.gmra.mrb[30].mxu0 %vm60_vm0, %v51_v53 }
  0xd7   :  { %v817_v58 = vpop.f32.mrb[0].mxu0 }
  0xd8   :  { %v229_v59 = vadd.f32 %v817_v58, %v1203_v57  ;;  %v223_v60 = vpop.f32.mrb[1].mxu0 }
  0xd9   :  { %v224_v61 = vadd.f32 %v1203_v57, %v223_v60 }
  0xda   :  { %v383_v0 = vmax.f32 %v229_v59, 0.0 }
  0xdb   :  { %v382_v62 = vmax.f32 %v224_v61, 0.0  ;;  %v820_v63 = vpop.f32.mrb[2].mxu0 }
  0xdc   :  { %v239_v1 = vadd.f32 %v820_v63, %v1203_v57  ;;  %v233_v2 = vpop.f32.mrb[3].mxu0 }
  0xdd   :  { %v234_v3 = vadd.f32 %v1203_v57, %v233_v2  ;;  %895 = vmatprep.mubr.f32.mxu0 %v382_v62 }
  0xde   :  { %896 = vmatmul.mubr.f32.vlgmr.msra.gmra.mrb[32].mxu0 %v383_v0  ;;  %v385_v6 = vmax.f32 %v239_v1, 0.0 }
  0xdf   :  { %v384_v4 = vmax.f32 %v234_v3, 0.0  ;;  %v823_v5 = vpop.f32.mrb[4].mxu0 }
  0xe0   :  { %v249_v7 = vadd.f32 %v823_v5, %v1203_v57  ;;  %v243_v8 = vpop.f32.mrb[5].mxu0 }
  0xe1   :  { %v244_v9 = vadd.f32 %v1203_v57, %v243_v8  ;;  %898 = vmatprep.mubr.f32.mxu0 %v384_v4 }
  0xe2   :  { %899 = vmatmul.mubr.f32.gmra.mrb[34].mxu0 %v385_v6  ;;  %v387_v12 = vmax.f32 %v249_v7, 0.0 }
  0xe3   :  { %v386_v10 = vmax.f32 %v244_v9, 0.0  ;;  %v826_v11 = vpop.f32.mrb[6].mxu0 }
  0xe4   :  { %v259_v13 = vadd.f32 %v826_v11, %v1203_v57  ;;  %v253_v14 = vpop.f32.mrb[7].mxu0 }
  0xe5   :  { %901 = vmatprep.mubr.f32.mxu0 %v386_v10  ;;  %v254_v15 = vadd.f32 %v1203_v57, %v253_v14 }
  0xe6   :  { %902 = vmatmul.mubr.f32.gmra.mrb[36].mxu0 %v387_v12  ;;  %v389_v18 = vmax.f32 %v259_v13, 0.0 }
  0xe7   :  { %v829_v16 = vpop.f32.mrb[8].mxu0  ;;  %v388_v17 = vmax.f32 %v254_v15, 0.0 }
  0xe8   :  { %v269_v19 = vadd.f32 %v829_v16, %v1203_v57  ;;  %v263_v20 = vpop.f32.mrb[9].mxu0 }
  0xe9   :  { %v264_v21 = vadd.f32 %v1203_v57, %v263_v20  ;;  %904 = vmatprep.mubr.f32.mxu1 %v388_v17 }
  0xea   :  { %905 = vmatmul.mubr.f32.vlgmr.msra.gmra.mrb[0].mxu1 %v389_v18  ;;  %v391_v24 = vmax.f32 %v269_v19, 0.0 }
  0xeb   :  { %v390_v22 = vmax.f32 %v264_v21, 0.0  ;;  %v832_v23 = vpop.f32.mrb[10].mxu0 }
  0xec   :  { %v279_v25 = vadd.f32 %v832_v23, %v1203_v57  ;;  %v273_v26 = vpop.f32.mrb[11].mxu0 }
  0xed   :  { %v274_v27 = vadd.f32 %v1203_v57, %v273_v26  ;;  %907 = vmatprep.mubr.f32.mxu1 %v390_v22 }
  0xee   :  { %908 = vmatmul.mubr.f32.gmra.mrb[2].mxu1 %v391_v24  ;;  %v393_v30 = vmax.f32 %v279_v25, 0.0 }
  0xef   :  { %v392_v28 = vmax.f32 %v274_v27, 0.0  ;;  %v835_v29 = vpop.f32.mrb[12].mxu0  ;;  %v1240_v27 = vld [vmem:[%s1374_s4] ss:$0 sm:$0xff] }
  0xf0   :  { %v289_v31 = vadd.f32 %v835_v29, %v1203_v57  ;;  %v283_v32 = vpop.f32.mrb[13].mxu0 }
  0xf1   :  { %v284_v33 = vadd.f32 %v1203_v57, %v283_v32  ;;  %910 = vmatprep.mubr.f32.mxu1 %v392_v28 }
  0xf2   :  { %911 = vmatmul.mubr.f32.gmra.mrb[4].mxu1 %v393_v30  ;;  %v395_v36 = vmax.f32 %v289_v31, 0.0 }
  0xf3   :  { %v394_v34 = vmax.f32 %v284_v33, 0.0  ;;  %v838_v35 = vpop.f32.mrb[14].mxu0 }
  0xf4   :  { %v299_v37 = vadd.f32 %v838_v35, %v1203_v57  ;;  %v293_v38 = vpop.f32.mrb[15].mxu0 }
  0xf5   :  { %v294_v39 = vadd.f32 %v1203_v57, %v293_v38  ;;  %913 = vmatprep.mubr.f32.mxu1 %v394_v34 }
  0xf6   :  { %914 = vmatmul.mubr.f32.gmra.mrb[6].mxu1 %v395_v36  ;;  %v397_v42 = vmax.f32 %v299_v37, 0.0 }
  0xf7   :  { %v396_v40 = vmax.f32 %v294_v39, 0.0  ;;  %v841_v41 = vpop.f32.mrb[16].mxu0 }
  0xf8   :  { %v309_v43 = vadd.f32 %v841_v41, %v1203_v57  ;;  %v303_v44 = vpop.f32.mrb[17].mxu0 }
  0xf9   :  { %v304_v45 = vadd.f32 %v1203_v57, %v303_v44  ;;  %916 = vmatprep.mubr.f32.mxu1 %v396_v40 }
  0xfa   :  { %917 = vmatmul.mubr.f32.gmra.mrb[8].mxu1 %v397_v42  ;;  %v399_v48 = vmax.f32 %v309_v43, 0.0 }
  0xfb   :  { %v398_v46 = vmax.f32 %v304_v45, 0.0  ;;  %v844_v47 = vpop.f32.mrb[18].mxu0 }
  0xfc   :  { %v319_v49 = vadd.f32 %v844_v47, %v1203_v57  ;;  %v313_v50 = vpop.f32.mrb[19].mxu0 }
  0xfd   :  { %v314_v51 = vadd.f32 %v1203_v57, %v313_v50  ;;  %919 = vmatprep.mubr.f32.mxu1 %v398_v46 }
  0xfe   :  { %920 = vmatmul.mubr.f32.gmra.mrb[10].mxu1 %v399_v48  ;;  %v401_v54 = vmax.f32 %v319_v49, 0.0 }
  0xff   :  { %v400_v52 = vmax.f32 %v314_v51, 0.0  ;;  %v847_v53 = vpop.f32.mrb[20].mxu0 }
 0x100   :  { %v329_v55 = vadd.f32 %v847_v53, %v1203_v57  ;;  %v323_v56 = vpop.f32.mrb[21].mxu0 }
 0x101   :  { %v324_v58 = vadd.f32 %v1203_v57, %v323_v56  ;;  %922 = vmatprep.mubr.f32.mxu1 %v400_v52 }
 0x102   :  { %923 = vmatmul.mubr.f32.gmra.mrb[12].mxu1 %v401_v54  ;;  %v403_v61 = vmax.f32 %v329_v55, 0.0 }
 0x103   :  { %v402_v59 = vmax.f32 %v324_v58, 0.0  ;;  %v850_v60 = vpop.f32.mrb[22].mxu0 }
 0x104   :  { %v339_v62 = vadd.f32 %v850_v60, %v1203_v57  ;;  %v333_v63 = vpop.f32.mrb[23].mxu0 }
 0x105   :  { %v334_v0 = vadd.f32 %v1203_v57, %v333_v63  ;;  %925 = vmatprep.mubr.f32.mxu1 %v402_v59 }
 0x106   :  { %926 = vmatmul.mubr.f32.gmra.mrb[14].mxu1 %v403_v61  ;;  %v405_v3 = vmax.f32 %v339_v62, 0.0 }
 0x107   :  { %v404_v1 = vmax.f32 %v334_v0, 0.0  ;;  %v853_v2 = vpop.f32.mrb[24].mxu0 }
 0x108   :  { %v349_v4 = vadd.f32 %v853_v2, %v1203_v57  ;;  %v343_v5 = vpop.f32.mrb[25].mxu0 }
 0x109   :  { %v344_v6 = vadd.f32 %v1203_v57, %v343_v5  ;;  %928 = vmatprep.mubr.f32.mxu1 %v404_v1 }
 0x10a   :  { %929 = vmatmul.mubr.f32.gmra.mrb[16].mxu1 %v405_v3  ;;  %v407_v9 = vmax.f32 %v349_v4, 0.0 }
 0x10b   :  { %v406_v7 = vmax.f32 %v344_v6, 0.0  ;;  %v856_v8 = vpop.f32.mrb[26].mxu0 }
 0x10c   :  { %v359_v10 = vadd.f32 %v856_v8, %v1203_v57  ;;  %v353_v11 = vpop.f32.mrb[27].mxu0 }
 0x10d   :  { %v354_v12 = vadd.f32 %v1203_v57, %v353_v11  ;;  %931 = vmatprep.mubr.f32.mxu1 %v406_v7 }
 0x10e   :  { %932 = vmatmul.mubr.f32.gmra.mrb[18].mxu1 %v407_v9  ;;  %v409_v15 = vmax.f32 %v359_v10, 0.0 }
 0x10f   :  { %v408_v13 = vmax.f32 %v354_v12, 0.0  ;;  %v859_v14 = vpop.f32.mrb[28].mxu0 }
 0x110   :  { %v369_v16 = vadd.f32 %v859_v14, %v1203_v57  ;;  %v363_v17 = vpop.f32.mrb[29].mxu0 }
 0x111   :  { %v364_v18 = vadd.f32 %v1203_v57, %v363_v17  ;;  %934 = vmatprep.mubr.f32.mxu1 %v408_v13 }
 0x112   :  { %935 = vmatmul.mubr.f32.gmra.mrb[20].mxu1 %v409_v15  ;;  %v411_v21 = vmax.f32 %v369_v16, 0.0 }
 0x113   :  { %v410_v19 = vmax.f32 %v364_v18, 0.0  ;;  %v862_v20 = vpop.f32.mrb[30].mxu0 }
 0x114   :  { %v379_v22 = vadd.f32 %v862_v20, %v1203_v57  ;;  %v373_v23 = vpop.f32.mrb[31].mxu0 }
 0x115   :  { %v374_v24 = vadd.f32 %v1203_v57, %v373_v23  ;;  %937 = vmatprep.mubr.f32.mxu1 %v410_v19 }
 0x116   :  { %938 = vmatmul.mubr.f32.gmra.mrb[22].mxu1 %v411_v21  ;;  %v413_v26 = vmax.f32 %v379_v22, 0.0 }
 0x117   :  { %v412_v25 = vmax.f32 %v374_v24, 0.0 }
 0x119   :  { %940 = vmatprep.mubr.f32.mxu1 %v412_v25 }
 0x11a   :  { %941 = vmatmul.mubr.f32.gmra.mrb[24].mxu1 %v413_v26 }
 0x1b1   :  { %v897_v28 = vpop.f32.mrb[32].mxu0 }
 0x1b2   :  { %v509_v29 = vadd.f32 %v897_v28, %v1240_v27  ;;  %v503_v30 = vpop.f32.mrb[33].mxu0 }
 0x1b3   :  { %v504_v31 = vadd.f32 %v1240_v27, %v503_v30 }
 0x1b4   :  { %663 = vst [vmem:[%s1375_s5 + $0x8] sm:$0xff] %v509_v29 }
 0x1b5   :  { %662 = vst [vmem:[%s1375_s5] sm:$0xff] %v504_v31  ;;  %v900_v57 = vpop.f32.mrb[34].mxu0 }
 0x1b6   :  { %v519_v32 = vadd.f32 %v900_v57, %v1240_v27  ;;  %v513_v33 = vpop.f32.mrb[35].mxu0 }
 0x1b7   :  { %v514_v34 = vadd.f32 %v1240_v27, %v513_v33 }
 0x1b8   :  { %665 = vst [vmem:[%s1375_s5 + $0x18] sm:$0xff] %v519_v32 }
 0x1b9   :  { %664 = vst [vmem:[%s1375_s5 + $0x10] sm:$0xff] %v514_v34  ;;  %v903_v35 = vpop.f32.mrb[36].mxu0 }
 0x1ba   :  { %v529_v36 = vadd.f32 %v903_v35, %v1240_v27  ;;  %v523_v37 = vpop.f32.mrb[37].mxu0 }
 0x1bb   :  { %v524_v38 = vadd.f32 %v1240_v27, %v523_v37 }
 0x1bc   :  { %667 = vst [vmem:[%s1375_s5 + $0x28] sm:$0xff] %v529_v36 }
 0x1bd   :  { %666 = vst [vmem:[%s1375_s5 + $0x20] sm:$0xff] %v524_v38  ;;  %v906_v39 = vpop.f32.mrb[0].mxu1 }
 0x1be   :  { %v539_v40 = vadd.f32 %v906_v39, %v1240_v27  ;;  %v533_v41 = vpop.f32.mrb[1].mxu1 }
 0x1bf   :  { %v534_v42 = vadd.f32 %v1240_v27, %v533_v41 }
 0x1c0   :  { %669 = vst [vmem:[%s1375_s5 + $0x38] sm:$0xff] %v539_v40 }
 0x1c1   :  { %668 = vst [vmem:[%s1375_s5 + $0x30] sm:$0xff] %v534_v42  ;;  %v909_v43 = vpop.f32.mrb[2].mxu1 }
 0x1c2   :  { %v549_v44 = vadd.f32 %v909_v43, %v1240_v27  ;;  %v543_v45 = vpop.f32.mrb[3].mxu1 }
 0x1c3   :  { %v544_v46 = vadd.f32 %v1240_v27, %v543_v45 }
 0x1c4   :  { %671 = vst [vmem:[%s1375_s5 + $0x48] sm:$0xff] %v549_v44 }
 0x1c5   :  { %670 = vst [vmem:[%s1375_s5 + $0x40] sm:$0xff] %v544_v46  ;;  %v912_v47 = vpop.f32.mrb[4].mxu1 }
 0x1c6   :  { %v559_v48 = vadd.f32 %v912_v47, %v1240_v27  ;;  %v553_v49 = vpop.f32.mrb[5].mxu1 }
 0x1c7   :  { %v554_v50 = vadd.f32 %v1240_v27, %v553_v49 }
 0x1c8   :  { %673 = vst [vmem:[%s1375_s5 + $0x58] sm:$0xff] %v559_v48 }
 0x1c9   :  { %672 = vst [vmem:[%s1375_s5 + $0x50] sm:$0xff] %v554_v50  ;;  %v915_v51 = vpop.f32.mrb[6].mxu1 }
 0x1ca   :  { %v569_v52 = vadd.f32 %v915_v51, %v1240_v27  ;;  %v563_v53 = vpop.f32.mrb[7].mxu1 }
 0x1cb   :  { %v564_v54 = vadd.f32 %v1240_v27, %v563_v53 }
 0x1cc   :  { %675 = vst [vmem:[%s1375_s5 + $0x68] sm:$0xff] %v569_v52 }
 0x1cd   :  { %674 = vst [vmem:[%s1375_s5 + $0x60] sm:$0xff] %v564_v54  ;;  %v918_v55 = vpop.f32.mrb[8].mxu1 }
 0x1ce   :  { %v579_v56 = vadd.f32 %v918_v55, %v1240_v27  ;;  %v573_v58 = vpop.f32.mrb[9].mxu1 }
 0x1cf   :  { %v574_v59 = vadd.f32 %v1240_v27, %v573_v58 }
 0x1d0   :  { %677 = vst [vmem:[%s1375_s5 + $0x78] sm:$0xff] %v579_v56 }
 0x1d1   :  { %676 = vst [vmem:[%s1375_s5 + $0x70] sm:$0xff] %v574_v59  ;;  %v921_v60 = vpop.f32.mrb[10].mxu1 }
 0x1d2   :  { %v589_v61 = vadd.f32 %v921_v60, %v1240_v27  ;;  %v583_v62 = vpop.f32.mrb[11].mxu1 }
 0x1d3   :  { %v584_v63 = vadd.f32 %v1240_v27, %v583_v62 }
 0x1d4   :  { %679 = vst [vmem:[%s1375_s5 + $0x88] sm:$0xff] %v589_v61 }
 0x1d5   :  { %678 = vst [vmem:[%s1375_s5 + $0x80] sm:$0xff] %v584_v63  ;;  %v924_v0 = vpop.f32.mrb[12].mxu1 }
 0x1d6   :  { %v599_v1 = vadd.f32 %v924_v0, %v1240_v27  ;;  %v593_v2 = vpop.f32.mrb[13].mxu1 }
 0x1d7   :  { %v594_v3 = vadd.f32 %v1240_v27, %v593_v2 }
 0x1d8   :  { %681 = vst [vmem:[%s1375_s5 + $0x98] sm:$0xff] %v599_v1 }
 0x1d9   :  { %680 = vst [vmem:[%s1375_s5 + $0x90] sm:$0xff] %v594_v3  ;;  %v927_v4 = vpop.f32.mrb[14].mxu1 }
 0x1da   :  { %v609_v5 = vadd.f32 %v927_v4, %v1240_v27  ;;  %v603_v6 = vpop.f32.mrb[15].mxu1 }
 0x1db   :  { %v604_v7 = vadd.f32 %v1240_v27, %v603_v6 }
 0x1dc   :  { %683 = vst [vmem:[%s1375_s5 + $0xa8] sm:$0xff] %v609_v5 }
 0x1dd   :  { %682 = vst [vmem:[%s1375_s5 + $0xa0] sm:$0xff] %v604_v7  ;;  %v930_v8 = vpop.f32.mrb[16].mxu1 }
 0x1de   :  { %v619_v9 = vadd.f32 %v930_v8, %v1240_v27  ;;  %v613_v10 = vpop.f32.mrb[17].mxu1 }
 0x1df   :  { %v614_v11 = vadd.f32 %v1240_v27, %v613_v10 }
 0x1e0   :  { %685 = vst [vmem:[%s1375_s5 + $0xb8] sm:$0xff] %v619_v9 }
 0x1e1   :  { %684 = vst [vmem:[%s1375_s5 + $0xb0] sm:$0xff] %v614_v11  ;;  %v933_v12 = vpop.f32.mrb[18].mxu1 }
 0x1e2   :  { %v629_v13 = vadd.f32 %v933_v12, %v1240_v27  ;;  %v623_v14 = vpop.f32.mrb[19].mxu1 }
 0x1e3   :  { %v624_v15 = vadd.f32 %v1240_v27, %v623_v14 }
 0x1e4   :  { %687 = vst [vmem:[%s1375_s5 + $0xc8] sm:$0xff] %v629_v13 }
 0x1e5   :  { %686 = vst [vmem:[%s1375_s5 + $0xc0] sm:$0xff] %v624_v15  ;;  %v936_v16 = vpop.f32.mrb[20].mxu1 }
 0x1e6   :  { %v639_v17 = vadd.f32 %v936_v16, %v1240_v27  ;;  %v633_v18 = vpop.f32.mrb[21].mxu1 }
 0x1e7   :  { %v634_v19 = vadd.f32 %v1240_v27, %v633_v18 }
 0x1e8   :  { %689 = vst [vmem:[%s1375_s5 + $0xd8] sm:$0xff] %v639_v17 }
 0x1e9   :  { %688 = vst [vmem:[%s1375_s5 + $0xd0] sm:$0xff] %v634_v19  ;;  %v939_v20 = vpop.f32.mrb[22].mxu1 }
 0x1ea   :  { %v649_v21 = vadd.f32 %v939_v20, %v1240_v27  ;;  %v643_v22 = vpop.f32.mrb[23].mxu1 }
 0x1eb   :  { %v644_v23 = vadd.f32 %v1240_v27, %v643_v22 }
 0x1ec   :  { %691 = vst [vmem:[%s1375_s5 + $0xe8] sm:$0xff] %v649_v21 }
 0x1ed   :  { %690 = vst [vmem:[%s1375_s5 + $0xe0] sm:$0xff] %v644_v23  ;;  %v942_v24 = vpop.f32.mrb[24].mxu1 }
 0x1ee   :  { %v659_v25 = vadd.f32 %v942_v24, %v1240_v27  ;;  %v653_v26 = vpop.f32.mrb[25].mxu1 }
 0x1ef   :  { %v654_v28 = vadd.f32 %v1240_v27, %v653_v26 }
 0x1f0   :  { %693 = vst [vmem:[%s1375_s5 + $0xf8] sm:$0xff] %v659_v25 }
 0x1f1   :  { %692 = vst [vmem:[%s1375_s5 + $0xf0] sm:$0xff] %v654_v28 }

</bundles_post_ra>
